<compile_context>
chip_gen: v7x
topology: tpu7x:2x2x1
jax: 0.10.0
libtpu: 0.0.40
codegen_flags: <defaults>
</compile_context>

<pallas_src>
import functools

import jax
import jax.numpy as jnp
from jax.experimental import pallas as pl
from jax.experimental.pallas import tpu as pltpu

HIDDEN = 128   # fc1 output width (from the PyTorch module)
LANES = 128    # lane-padded fused-head width (A advantage cols + 1 value col + zero pad)


def _round_up(v, m):
    return ((v + m - 1) // m) * m


def _d3qn_kernel(act_dim, x_ref, w1_ref, b1_ref, wh_ref, bh_ref, q_ref):
    # x_ref:  [tb, E]     f32  (cast to bf16 in-kernel for the MXU)
    # w1_ref: [E, 128]    bf16
    # b1_ref: [1, 128]    f32
    # wh_ref: [128, 128]  bf16  (cols 0..A-1 = advantage head, col A = value head, rest 0)
    # bh_ref: [1, 128]    f32
    # q_ref:  [tb, 128]   bf16  (lane-dense output slab)
    x = x_ref[...].astype(w1_ref.dtype)
    h = jnp.dot(x, w1_ref[...], preferred_element_type=jnp.float32)       # [tb, 128] f32
    h = jnp.maximum(h + b1_ref[...], 0.0).astype(wh_ref.dtype)            # relu(fc1), bf16

    head = jnp.dot(h, wh_ref[...], preferred_element_type=jnp.float32)    # [tb, 128] f32
    head = head + bh_ref[...]

    # Dueling combine with a single cross-lane reduction:
    # padded columns (> act_dim) are exactly zero, so sum(head) = sum(As) + V.
    col = jax.lax.broadcasted_iota(jnp.int32, head.shape, dimension=1)
    total = jnp.sum(head, axis=-1, keepdims=True)
    v = jnp.sum(jnp.where(col == act_dim, head, 0.0), axis=-1, keepdims=True)
    mean_as = (total - v) * (1.0 / act_dim)

    # Columns >= act_dim carry garbage here; the wrapper slices them off.
    q_ref[...] = (head + (v - mean_as)).astype(q_ref.dtype)


def prepare_params(w1, b1, wq, bq, wv, bv):
    """One-time parameter prep (keep OFF the per-step hot path)."""
    E, H = w1.shape
    A = wq.shape[1]
    assert H == HIDDEN and A + 1 <= LANES, "act_dim >= 128 unsupported by this kernel"

    # Fuse the advantage and value heads into one lane-padded [128, 128] weight/bias.
    w_head = jnp.zeros((HIDDEN, LANES), jnp.float32)
    w_head = w_head.at[:, :A].set(wq.astype(jnp.float32))
    w_head = w_head.at[:, A:A + 1].set(wv.astype(jnp.float32))
    b_head = jnp.zeros((1, LANES), jnp.float32)
    b_head = b_head.at[:, :A].set(jnp.reshape(bq, (1, A)).astype(jnp.float32))
    b_head = b_head.at[:, A:A + 1].set(jnp.reshape(bv, (1, 1)).astype(jnp.float32))

    return {
        "w1": w1.astype(jnp.bfloat16),
        "b1": jnp.reshape(b1, (1, HIDDEN)).astype(jnp.float32),
        "wh": w_head.astype(jnp.bfloat16),
        "bh": b_head.astype(jnp.float32),
        "act_dim": int(A),
    }


@functools.partial(jax.jit, static_argnums=(5, 6))
def _forward_impl(x, w1_bf, b1_f32, wh_bf, bh_f32, act_dim, block_b):
    B, E = x.shape

    # Batch tiling: rows in multiples of 16 (bf16 sublane packing). Cap the tile
    # at 4096 rows so double-buffered tiles stay well under the v7x 32 MiB
    # default scoped-VMEM limit; split into >= 2 grid steps on large batches so
    # the "parallel" axis shards across v7x's two TensorCores.
    b16 = _round_up(B, 16)
    tb = min(block_b, 4096, b16)
    if b16 >= 512 and b16 <= tb:
        tb = _round_up((b16 + 1) // 2, 16)
    b_pad = _round_up(B, tb)

    x_in = x if b_pad == B else jnp.pad(x, ((0, b_pad - B), (0, 0)))
    grid = (b_pad // tb,)

    flops = 2 * b_pad * (E * HIDDEN + HIDDEN * LANES)
    bytes_accessed = (x_in.size * x_in.dtype.itemsize
                      + w1_bf.size * 2 + wh_bf.size * 2
                      + b1_f32.size * 4 + bh_f32.size * 4
                      + b_pad * LANES * 2)                 # bf16 output slab

    q_pad = pl.pallas_call(
        functools.partial(_d3qn_kernel, act_dim),
        out_shape=jax.ShapeDtypeStruct((b_pad, LANES), jnp.bfloat16),
        grid=grid,
        in_specs=[
            pl.BlockSpec((tb, E), lambda i: (i, 0)),          # x tile streams over B
            pl.BlockSpec((E, HIDDEN), lambda i: (0, 0)),      # weights VMEM-resident
            pl.BlockSpec((1, HIDDEN), lambda i: (0, 0)),
            pl.BlockSpec((HIDDEN, LANES), lambda i: (0, 0)),
            pl.BlockSpec((1, LANES), lambda i: (0, 0)),
        ],
        out_specs=pl.BlockSpec((tb, LANES), lambda i: (i, 0)),  # lane-dense output slab
        compiler_params=pltpu.CompilerParams(
            dimension_semantics=("parallel",)),
        cost_estimate=pl.CostEstimate(
            flops=flops, transcendentals=0, bytes_accessed=bytes_accessed),
    )(x_in, w1_bf, b1_f32, wh_bf, bh_f32)

    return q_pad[:B, :act_dim].astype(jnp.float32)


def d3qn_forward(params, x, *, block_b=2048):
    return _forward_impl(x, params["w1"], params["b1"], params["wh"], params["bh"],
                         params["act_dim"], block_b)


def reference_forward(x, w1, b1, wq, bq, wv, bv):
    h = jnp.maximum(x @ w1 + b1, 0.0)
    As = h @ wq + bq
    V = h @ wv + bv
    return As + (V - jnp.mean(As, axis=-1, keepdims=True))


if __name__ == "__main__":
    # Small, forward-consistent config (synthetic): env_dim=16, act_dim=8, hidden=128.
    B, ENV_DIM, ACT_DIM = 8, 16, 8

    key = jax.random.PRNGKey(0)
    kx, k1, k2, k3, k4, k5, k6 = jax.random.split(key, 7)

    x = jax.random.normal(kx, (B, ENV_DIM), dtype=jnp.float32)

    # Deterministic parameter init (PyTorch-Linear-style uniform bounds),
    # stored as [in, out] for the kernel's x @ W convention.
    def init_linear(kw, kb, fan_in, fan_out):
        bound = 1.0 / (fan_in ** 0.5)
        w = jax.random.uniform(kw, (fan_in, fan_out), jnp.float32, -bound, bound)
        b = jax.random.uniform(kb, (1, fan_out), jnp.float32, -bound, bound)
        return w, b

    w1, b1 = init_linear(k1, k2, ENV_DIM, HIDDEN)
    wq, bq = init_linear(k3, k4, HIDDEN, ACT_DIM)
    wv, bv = init_linear(k5, k6, HIDDEN, 1)

    # One-time parameter prep (fused heads, bf16 casts) -- outside the hot path.
    params = prepare_params(w1, b1, wq, bq, wv, bv)

    q = d3qn_forward(params, x)
    jax.block_until_ready(q)

    q_ref = reference_forward(x, w1, b1, wq, bq, wv, bv)
    assert q.shape == (B, ACT_DIM)
    # bf16 MXU operands + bf16 output vs f32 reference -> bf16-level tolerance.
    assert jnp.allclose(q, q_ref, atol=5e-2, rtol=5e-2), "mismatch vs reference"

    print("KERNEL_OK")
</pallas_src>

<mosaic_0001>
module attributes {stable_mosaic.version = 11 : i64} {
  func.func @_d3qn_kernel(%arg0: i32, %arg1: memref<16x16xf32, #tpu.memory_space<vmem>>, %arg2: memref<16x128xbf16, #tpu.memory_space<vmem>>, %arg3: memref<1x128xf32, #tpu.memory_space<vmem>>, %arg4: memref<128x128xbf16, #tpu.memory_space<vmem>>, %arg5: memref<1x128xf32, #tpu.memory_space<vmem>>, %arg6: memref<16x128xbf16, #tpu.memory_space<vmem>>) attributes {dimension_semantics = [#tpu.dimension_semantics<parallel>], iteration_bounds = array<i64: 1>, scalar_prefetch = 0 : i64, scratch_operands = 0 : i64, tpu.core_type = #tpu.core_type<tc>, window_params = [{transform_indices = @transform_0, window_bounds = array<i64: 16, 16>}, {pipeline_mode = #tpu.pipeline_mode<synchronous>, transform_indices = @transform_1, window_bounds = array<i64: 16, 128>}, {pipeline_mode = #tpu.pipeline_mode<synchronous>, transform_indices = @transform_2, window_bounds = array<i64: 1, 128>}, {pipeline_mode = #tpu.pipeline_mode<synchronous>, transform_indices = @transform_3, window_bounds = array<i64: 128, 128>}, {pipeline_mode = #tpu.pipeline_mode<synchronous>, transform_indices = @transform_4, window_bounds = array<i64: 1, 128>}, {transform_indices = @transform_5, window_bounds = array<i64: 16, 128>}]} {
    %c0 = arith.constant 0 : index
    %c0_0 = arith.constant 0 : index
    %0 = vector.load %arg1[%c0, %c0_0] : memref<16x16xf32, #tpu.memory_space<vmem>>, vector<16x16xf32>
    %1 = arith.truncf %0 : vector<16x16xf32> to vector<16x16xbf16>
    %c0_1 = arith.constant 0 : index
    %c0_2 = arith.constant 0 : index
    %2 = vector.load %arg2[%c0_1, %c0_2] : memref<16x128xbf16, #tpu.memory_space<vmem>>, vector<16x128xbf16>
    %cst = arith.constant dense<0.000000e+00> : vector<16x128xf32>
    %3 = tpu.matmul %1, %2, %cst {dimension_numbers = #tpu.dot_dimension_numbers<[1], [0], [0], [1], [0, 0, 1, 1], [], []>} : vector<16x16xbf16>, vector<16x128xbf16>, vector<16x128xf32> -> vector<16x128xf32>
    %c0_3 = arith.constant 0 : index
    %c0_4 = arith.constant 0 : index
    %4 = vector.load %arg3[%c0_3, %c0_4] : memref<1x128xf32, #tpu.memory_space<vmem>>, vector<1x128xf32>
    %5 = vector.broadcast %4 : vector<1x128xf32> to vector<16x128xf32>
    %6 = arith.addf %3, %5 : vector<16x128xf32>
    %cst_5 = arith.constant 0.000000e+00 : f32
    %7 = vector.broadcast %cst_5 : f32 to vector<16x128xf32>
    %8 = arith.maximumf %6, %7 : vector<16x128xf32>
    %9 = arith.truncf %8 : vector<16x128xf32> to vector<16x128xbf16>
    %c0_6 = arith.constant 0 : index
    %c0_7 = arith.constant 0 : index
    %10 = vector.load %arg4[%c0_6, %c0_7] : memref<128x128xbf16, #tpu.memory_space<vmem>>, vector<128x128xbf16>
    %cst_8 = arith.constant dense<0.000000e+00> : vector<16x128xf32>
    %11 = tpu.matmul %9, %10, %cst_8 {dimension_numbers = #tpu.dot_dimension_numbers<[1], [0], [0], [1], [0, 0, 1, 1], [], []>} : vector<16x128xbf16>, vector<128x128xbf16>, vector<16x128xf32> -> vector<16x128xf32>
    %c0_9 = arith.constant 0 : index
    %c0_10 = arith.constant 0 : index
    %12 = vector.load %arg5[%c0_9, %c0_10] : memref<1x128xf32, #tpu.memory_space<vmem>>, vector<1x128xf32>
    %13 = vector.broadcast %12 : vector<1x128xf32> to vector<16x128xf32>
    %14 = arith.addf %11, %13 : vector<16x128xf32>
    %15 = tpu.iota {dimensions = array<i32: 1>} : vector<16x128xi32>
    %cst_11 = arith.constant dense<0.000000e+00> : vector<16xf32>
    %16 = vector.multi_reduction <add>, %14, %cst_11 [1] : vector<16x128xf32> to vector<16xf32>
    %17 = vector.shape_cast %16 : vector<16xf32> to vector<16x1xf32>
    %c8_i32 = arith.constant 8 : i32
    %18 = vector.broadcast %c8_i32 : i32 to vector<16x128xi32>
    %19 = arith.cmpi eq, %15, %18 : vector<16x128xi32>
    %cst_12 = arith.constant 0.000000e+00 : f32
    %20 = vector.broadcast %cst_12 : f32 to vector<16x128xf32>
    %21 = arith.select %19, %14, %20 : vector<16x128xi1>, vector<16x128xf32>
    %cst_13 = arith.constant dense<0.000000e+00> : vector<16xf32>
    %22 = vector.multi_reduction <add>, %21, %cst_13 [1] : vector<16x128xf32> to vector<16xf32>
    %23 = vector.shape_cast %22 : vector<16xf32> to vector<16x1xf32>
    %24 = arith.subf %17, %23 : vector<16x1xf32>
    %cst_14 = arith.constant 1.250000e-01 : f32
    %25 = vector.broadcast %cst_14 : f32 to vector<16x1xf32>
    %26 = arith.mulf %24, %25 : vector<16x1xf32>
    %27 = arith.subf %23, %26 : vector<16x1xf32>
    %28 = vector.broadcast %27 : vector<16x1xf32> to vector<16x128xf32>
    %29 = arith.addf %14, %28 : vector<16x128xf32>
    %30 = arith.truncf %29 : vector<16x128xf32> to vector<16x128xbf16>
    %c0_15 = arith.constant 0 : index
    %c0_16 = arith.constant 0 : index
    %31 = vector.load %arg6[%c0_15, %c0_16] : memref<16x128xbf16, #tpu.memory_space<vmem>>, vector<16x128xbf16>
    tpu.vector_store %arg6[%c0_15, %c0_16], %30 {strides = array<i32>} : memref<16x128xbf16, #tpu.memory_space<vmem>>, vector<16x128xbf16>,
    return
  }
  func.func @transform_0(%arg0: i32) -> (i32, i32) {
    %c0_i32 = arith.constant 0 : i32
    %c0_i32_0 = arith.constant 0 : i32
    return %arg0, %c0_i32 : i32, i32
  }
  func.func @transform_1(%arg0: i32) -> (i32, i32) {
    %c0_i32 = arith.constant 0 : i32
    %c0_i32_0 = arith.constant 0 : i32
    %c0_i32_1 = arith.constant 0 : i32
    return %c0_i32, %c0_i32_0 : i32, i32
  }
  func.func @transform_2(%arg0: i32) -> (i32, i32) {
    %c0_i32 = arith.constant 0 : i32
    %c0_i32_0 = arith.constant 0 : i32
    %c0_i32_1 = arith.constant 0 : i32
    return %c0_i32, %c0_i32_0 : i32, i32
  }
  func.func @transform_3(%arg0: i32) -> (i32, i32) {
    %c0_i32 = arith.constant 0 : i32
    %c0_i32_0 = arith.constant 0 : i32
    %c0_i32_1 = arith.constant 0 : i32
    return %c0_i32, %c0_i32_0 : i32, i32
  }
  func.func @transform_4(%arg0: i32) -> (i32, i32) {
    %c0_i32 = arith.constant 0 : i32
    %c0_i32_0 = arith.constant 0 : i32
    %c0_i32_1 = arith.constant 0 : i32
    return %c0_i32, %c0_i32_0 : i32, i32
  }
  func.func @transform_5(%arg0: i32) -> (i32, i32) {
    %c0_i32 = arith.constant 0 : i32
    %c0_i32_0 = arith.constant 0 : i32
    return %arg0, %c0_i32 : i32, i32
  }
}

</mosaic_0001>

<bundles_post_ra>
// kernel: _forward_impl.1
= control target key start
LH: loop header
LB: loop body
LE: loop exit
PB: predicated region body
PF: predicated region fallthrough
CT: control target
= control target key end

     0   :  { %10 = vsyncpa [#allocation3], 0  ;;  %s345_s18 = smov [#allocation2]   ;;  %s410_s0 = inlined_call_operand.vmem [shape: f32[16,16], index: 0, kind: input, shape index: {}]   ;;  %s411_s1 = inlined_call_operand.vmem [shape: bf16[16,128], index: 1, kind: input, shape index: {}]   ;;  %s412_s2 = inlined_call_operand.vmem [shape: f32[1,128], index: 2, kind: input, shape index: {}]   ;;  %s413_s3 = inlined_call_operand.hbm [shape: bf16[128,128], index: 3, kind: input, shape index: {}]   ;;  %s414_s4 = inlined_call_operand.vmem [shape: f32[1,128], index: 4, kind: input, shape index: {}]   ;;  %s415_s5 = inlined_call_operand.vmem [shape: bf16[16,128], index: 5, kind: output, shape index: {}]  }
   0x1   :  { %s22_s19 = sshll.u32 %s345_s18, 4  ;;  %s321_s22 = scalar_lea.hbm %s413_s3, 1024  ;;  %s23_s19 = int_to_ptr.vmem [resolvable:$true] %s22_s19 }
   0x2   :  { %p322_p0 = scmp.ne.s32.totalorder %s413_s3, %s321_s22  ;;  %p325_p1 = scmp.lt.u32.totalorder %s321_s22, %s413_s3 }
   0x4   :  { %p327_p2 = pnand %p325_p1, %p322_p0 }
   0x6   :  { %330 = shalt.err (!%p327_p2)
}
   0x7   :  { %s331_s27 = scalar_lea.vmem %s23_s19, 1024  ;;  %p336_p4 = scmp.lt.s32.totalorder %s23_s19, %s23_s19 }
   0x8   :  { %p332_p3 = scmp.ne.s32.totalorder %s23_s19, %s331_s27  ;;  %p337_p5 = scmp.lt.s32.totalorder %s331_s27, %s331_s27 }
   0xa   :  { %p338_p6 = por %p337_p5, %p336_p4 }
   0xc   :  { %p339_p7 = pnand %p338_p6, %p332_p3 }
   0xe   :  { %342 = shalt.err (!%p339_p7)
}
   0xf   :  { %s346_s28 = smov 64   ;;  %s347_s29 = smov 4  }
  0x10   :  { %28 = dma.hbm_to_vmem [thread:$0]  %s413_s3, 1024, %s23_s19, [#allocation3], %s346_s28, %s346_s28, %s347_s29  }
  0x11   :  { %343 = dma.done.wait [#allocation3], 1024  }
  0x12   :  { %344 = vsyncadd [#allocation3], 4294966272  ;;  %v348_v0 = vmov 0.0   ;;  %vm349_vm0 = vmmov 0   ;;  %v312_v1 = vld [vmem:[%s411_s1] sm:$0xff]   ;;  %v36_v3 = vld [vmem:[%s410_s0 + $0x8] sm:$0xff]  ;;  %v213_v23 = vlaneseq }
  0x13   :  { %281 = vmatprep.subr.bf16.mxu0 %v348_v0  ;;  %283 = vmatprep.mubr.msk.bf16.mxu0 %vm349_vm0, %v348_v0  ;;  %v35_v2 = vld [vmem:[%s410_s0] sm:$0xff]  ;;  %vm53_vm1 = vcmask 130048   ;;  %v314_v6 = vld [vmem:[#allocation2 + $0x8] sm:$0xff]   ;;  %v315_v7 = vld [vmem:[#allocation2 + $0x10] sm:$0xff]  }
  0x14   :  { %287 = vmatprep.subr.bf16.mxu1 %v348_v0  ;;  %303 = vmatprep.mubr.msk.bf16.mxu1 %vm349_vm0, %v348_v0  ;;  %v37_v4 = vpack.c.bf16 %v36_v3, %v35_v2  ;;  %v313_v5 = vld [vmem:[#allocation2] sm:$0xff]   ;;  %v316_v8 = vld [vmem:[#allocation2 + $0x18] sm:$0xff]   ;;  %v318_v10 = vld [vmem:[#allocation2 + $0x28] sm:$0xff]   ;;  %v214_v24 = vand.u32 127, %v213_v23 }
  0x15   :  { %282 = vmatpush3.bf16.msra.mxu0 %v312_v1  ;;  %288 = vmatpush3.bf16.msra.mxu1 %v313_v5  ;;  %v317_v9 = vld [vmem:[#allocation2 + $0x20] sm:$0xff]   ;;  %v319_v11 = vld [vmem:[#allocation2 + $0x30] sm:$0xff]   ;;  %v320_v12 = vld [vmem:[#allocation2 + $0x38] sm:$0xff]  }
  0x16   :  { %289 = vmatprep.subr.bf16.mxu1 %v348_v0  ;;  %v249_v13 = vld [vmem:[%s412_s2] ss:$0 sm:$0xff]  ;;  %vm219_vm2 = vcmp.eq.s32.totalorder %v214_v24, 8 }
  0x17   :  { %v252_v25 = vld [vmem:[%s414_s4] ss:$0 sm:$0xff] }
  0x18   :  { %284 = vmatmul.mubr.msk.bf16.vlgmr.msra.gmra.mrb[0].mxu0 %vm53_vm1, %v37_v4 }
  0x19   :  { %290 = vmatpush3.bf16.msra.mxu1 %v314_v6 }
  0x1a   :  { %291 = vmatprep.subr.bf16.mxu1 %v348_v0 }
  0x1d   :  { %292 = vmatpush3.bf16.msra.mxu1 %v315_v7 }
  0x1e   :  { %293 = vmatprep.subr.bf16.mxu1 %v348_v0 }
  0x21   :  { %294 = vmatpush3.bf16.msra.mxu1 %v316_v8 }
  0x22   :  { %295 = vmatprep.subr.bf16.mxu1 %v348_v0 }
  0x25   :  { %296 = vmatpush3.bf16.msra.mxu1 %v317_v9 }
  0x26   :  { %297 = vmatprep.subr.bf16.mxu1 %v348_v0 }
  0x29   :  { %298 = vmatpush3.bf16.msra.mxu1 %v318_v10 }
  0x2a   :  { %299 = vmatprep.subr.bf16.mxu1 %v348_v0 }
  0x2d   :  { %300 = vmatpush3.bf16.msra.mxu1 %v319_v11 }
  0x2e   :  { %301 = vmatprep.subr.bf16.mxu1 %v348_v0 }
  0x31   :  { %302 = vmatpush3.bf16.msra.mxu1 %v320_v12 }
  0xeb   :  { %v91_v14 = vpop.f32.mrb[0].mxu0 }
  0xec   :  { %v92_v15 = vadd.f32 %v249_v13, %v91_v14  ;;  %v285_v16 = vpop.f32.mrb[1].mxu0 }
  0xed   :  { %v94_v17 = vpop.f32.mrb[2].mxu0 }
  0xee   :  { %v95_v18 = vadd.f32 %v249_v13, %v94_v17  ;;  %v286_v19 = vpop.f32.mrb[3].mxu0  ;;  %v98_v20 = vmax.f32 %v92_v15, 0.0 }
  0xf0   :  { %v99_v21 = vmax.f32 %v95_v18, 0.0 }
  0xf2   :  { %v100_v22 = vpack.c.bf16 %v99_v21, %v98_v20 }
  0xf4   :  { %304 = vmatmul.mubr.bf16.vlgmr.msra.gmra.mrb[0].mxu1 %v100_v22 }
 0x1c7   :  { %v206_v26 = vpop.f32.mrb[0].mxu1 }
 0x1c8   :  { %v207_v27 = vadd.f32 %v252_v25, %v206_v26  ;;  %v305_v28 = vpop.f32.mrb[1].mxu1 }
 0x1c9   :  { %v209_v29 = vpop.f32.mrb[2].mxu1 }
 0x1ca   :  { %v210_v30 = vadd.f32 %v252_v25, %v209_v29  ;;  %215 = vadd.xlane.f32.xlu0 %v207_v27  ;;  %v306_v31 = vpop.f32.mrb[3].mxu1  ;;  %v220_v32 = vsel %vm219_vm2, %v207_v27, 0.0 }
 0x1cb   :  { %222 = vadd.xlane.f32.xlu1 %v220_v32 }
 0x1cc   :  { %v221_v33 = vsel %vm219_vm2, %v210_v30, 0.0 }
 0x1ce   :  { %217 = vadd.xlane.f32.xlu0 %v210_v30 }
 0x1cf   :  { %224 = vadd.xlane.f32.xlu1 %v221_v33 }
 0x257   :  { %v216_v34 = vpop.xlane.xlu0 %215 }
 0x258   :  { %v223_v35 = vpop.xlane.xlu1 %222 }
 0x259   :  { %v226_v36 = vsub.f32 %v216_v34, %v223_v35 }
 0x25b   :  { %v228_v37 = vmul.f32 0.125, %v226_v36  ;;  %v218_v38 = vpop.xlane.xlu0 %217 }
 0x25c   :  { %v225_v39 = vpop.xlane.xlu1 %224 }
 0x25d   :  { %v227_v40 = vsub.f32 %v218_v38, %v225_v39  ;;  %v230_v41 = vsub.f32 %v223_v35, %v228_v37 }
 0x25f   :  { %v229_v42 = vmul.f32 0.125, %v227_v40  ;;  %v232_v44 = vadd.f32 %v230_v41, %v207_v27 }
 0x261   :  { %v231_v43 = vsub.f32 %v225_v39, %v229_v42 }
 0x263   :  { %v233_v45 = vadd.f32 %v231_v43, %v210_v30 }
 0x265   :  { %v268_v46 = vpack.c.bf16 %v233_v45, %v232_v44 }
 0x267   :  { %269 = vst [vmem:[%s415_s5] sm:$0xff] %v268_v46  }
 0x268   :  { %248 = vsyncpa [#allocation3], 1 }

</bundles_post_ra>
